<compile_context>
chip_gen: v7x
topology: tpu7x:2x2x1
jax: 0.10.0
libtpu: 0.0.40
codegen_flags: <defaults>
</compile_context>

<pallas_src>
import jax
import jax.numpy as jnp
from jax import lax
from jax.experimental import pallas as pl
from jax.experimental.pallas import tpu as pltpu


def _delta_rule_kernel(L_ref, d_ref, x_ref, out_ref, carry_ref):
    # L_ref    : VMEM (T_TILE, T_TILE) lower-triangular scan matrix (f32)
    # d_ref    : VMEM (T_TILE, 1)      carry decay (1-lr)^(t+1)     (f32)
    # x_ref    : VMEM (T_TILE, S_TILE) input tile
    # out_ref  : VMEM (T_TILE, S_TILE) running p-estimates
    # carry_ref: VMEM (1, S_TILE) f32 scratch: p at end of previous time tile
    t_tile = x_ref.shape[0]

    # First time-tile of this sequence tile -> reset carry to p0 = 0.5
    @pl.when(pl.program_id(1) == 0)
    def _():
        carry_ref[...] = jnp.full(carry_ref.shape, 0.5, dtype=carry_ref.dtype)

    x = x_ref[...].astype(jnp.float32)
    # MXU: (T_TILE, T_TILE) @ (T_TILE, S_TILE) -> whole tile of the scan at once.
    p = jnp.dot(
        L_ref[...],
        x,
        preferred_element_type=jnp.float32,
        precision=lax.Precision.HIGHEST,
    )
    p = p + d_ref[...] * carry_ref[...]          # (T,1) * (1,S) broadcast
    out_ref[...] = p.astype(out_ref.dtype)
    carry_ref[...] = p[t_tile - 1:, :]           # carry = last row of this tile


def delta_rule_reference(lr, x):
    """Pure-JAX reference mirroring the PyTorch loop (order == 0)."""
    T, S, _ = x.shape
    lr_c = jnp.clip(jnp.asarray(lr, x.dtype), 0.0, 1.0)

    def step(p_prev, x_t):
        p_new = p_prev + lr_c * (x_t[:, 0] - p_prev)
        return p_new, p_new

    p0 = jnp.full((S,), 0.5, dtype=x.dtype)
    _, ps = lax.scan(step, p0, x)
    return ps[..., None]


def delta_rule_forward(lr, x, *, t_tile=128, s_tile=128, min_pallas_elems=8192):
    """order-0 DeltaRule forward. x: (T, S, 1) float. Returns (T, S, 1)."""
    T, S, D = x.shape
    assert D == 1, "order-0 DeltaRule expects trailing feature dim of 1"

    # pallas_call fixed overhead dominates tiny problems -> plain lax.scan.
    if T * S < min_pallas_elems:
        return delta_rule_reference(lr, x)

    dtype = x.dtype
    lr_c = jnp.clip(jnp.asarray(lr, jnp.float32), 0.0, 1.0)

    num_t = (T + t_tile - 1) // t_tile
    num_s = (S + s_tile - 1) // s_tile
    T_pad, S_pad = num_t * t_tile, num_s * s_tile

    x2d = x[..., 0]                              # (T, S): time=sublane, seq=lane
    if (T_pad, S_pad) != (T, S):
        # Pad S up to a lane-dense multiple of 128; pad T to a tile multiple.
        # L is lower triangular, so trailing time padding never corrupts real rows.
        x2d = jnp.pad(x2d, ((0, T_pad - T), (0, S_pad - S)))

    # Hoisted constants (built once, outside the kernel):
    #   L[t, i] = lr * (1-lr)^(t-i)  for i <= t,  d[t] = (1-lr)^(t+1)
    k = jnp.arange(t_tile, dtype=jnp.float32)
    diff = k[:, None] - k[None, :]
    log_omr = jnp.log(jnp.maximum(1.0 - lr_c, jnp.float32(1e-30)))
    L = jnp.where(diff >= 0.0, lr_c * jnp.exp(diff * log_omr), 0.0).astype(jnp.float32)
    d = jnp.exp((k + 1.0) * log_omr)[:, None].astype(jnp.float32)

    out2d = pl.pallas_call(
        _delta_rule_kernel,
        out_shape=jax.ShapeDtypeStruct((T_pad, S_pad), dtype),
        grid=(num_s, num_t),
        in_specs=[
            pl.BlockSpec((t_tile, t_tile), lambda s, t: (0, 0)),   # L (constant block)
            pl.BlockSpec((t_tile, 1), lambda s, t: (0, 0)),        # d (constant block)
            pl.BlockSpec((t_tile, s_tile), lambda s, t: (t, s)),   # x tile
        ],
        out_specs=pl.BlockSpec((t_tile, s_tile), lambda s, t: (t, s)),
        scratch_shapes=[pltpu.VMEM((1, s_tile), jnp.float32)],     # p carry
        compiler_params=pltpu.CompilerParams(
            dimension_semantics=("parallel", "arbitrary"),
            vmem_limit_bytes=32 * 1024 * 1024,
        ),
    )(L, d, x2d)

    return out2d[:T, :S][..., None]              # back to (T, S, 1)


# TODO(synk): order=1 ("transition"/bigram) mode is unreachable with the default
# config in the given snippet (hconfig is undefined there); only order-0 is kernelized.

if __name__ == "__main__":
    key = jax.random.PRNGKey(0)
    k_lr, k_x = jax.random.split(key)

    # Deterministic parameter init matching __init__: loglr ~ U(-2.5, -0.5), lr = 10**loglr
    loglr = jax.random.uniform(k_lr, (), jnp.float32, minval=-2.5, maxval=-0.5)
    lr = 10.0 ** loglr

    # Example input: (n_time_steps=256, n_seqs=192, 1) -> pads to (256, 256),
    # grid (2 sequence tiles  x  2 time tiles), exercises padding + carry.
    T, S = 256, 192
    x = jax.random.uniform(k_x, (T, S, 1), jnp.float32)

    out = delta_rule_forward(lr, x)
    out = jax.block_until_ready(out)

    ref = delta_rule_reference(lr, x)
    assert out.shape == (T, S, 1)
    # Block-matmul reassociates the recurrence sum -> allow small fp drift.
    assert jnp.allclose(out, ref, atol=5e-3, rtol=5e-3), "kernel mismatch vs reference"

    print("KERNEL_OK")
</pallas_src>

<mosaic_0001>
module attributes {stable_mosaic.version = 11 : i64} {
  func.func @_delta_rule_kernel(%arg0: i32, %arg1: i32, %arg2: memref<128x128xf32, #tpu.memory_space<vmem>>, %arg3: memref<128x1xf32, #tpu.memory_space<vmem>>, %arg4: memref<128x128xf32, #tpu.memory_space<vmem>>, %arg5: memref<128x128xf32, #tpu.memory_space<vmem>>, %arg6: memref<1x128xf32, #tpu.memory_space<vmem>>) attributes {dimension_semantics = [#tpu.dimension_semantics<parallel>, #tpu.dimension_semantics<arbitrary>], iteration_bounds = array<i64: 2, 2>, scalar_prefetch = 0 : i64, scratch_operands = 1 : i64, tpu.core_type = #tpu.core_type<tc>, window_params = [{pipeline_mode = #tpu.pipeline_mode<synchronous>, transform_indices = @transform_0, window_bounds = array<i64: 128, 128>}, {pipeline_mode = #tpu.pipeline_mode<synchronous>, transform_indices = @transform_1, window_bounds = array<i64: 128, 1>}, {transform_indices = @transform_2, window_bounds = array<i64: 128, 128>}, {transform_indices = @transform_3, window_bounds = array<i64: 128, 128>}]} {
    %c0_i32 = arith.constant 0 : i32
    %0 = arith.cmpi eq, %arg1, %c0_i32 : i32
    %1 = arith.extui %0 : i1 to i32
    %c0_i32_0 = arith.constant 0 : i32
    %2 = arith.cmpi ne, %1, %c0_i32_0 : i32
    scf.if %2 {
      %cst_12 = arith.constant 5.000000e-01 : f32
      %15 = vector.broadcast %cst_12 : f32 to vector<1x128xf32>
      %c0_13 = arith.constant 0 : index
      %c0_14 = arith.constant 0 : index
      %16 = vector.load %arg6[%c0_13, %c0_14] : memref<1x128xf32, #tpu.memory_space<vmem>>, vector<1x128xf32>
      tpu.vector_store %arg6[%c0_13, %c0_14], %15 {strides = array<i32>} : memref<1x128xf32, #tpu.memory_space<vmem>>, vector<1x128xf32>,
    } else {
    }
    %c0 = arith.constant 0 : index
    %c0_1 = arith.constant 0 : index
    %3 = vector.load %arg4[%c0, %c0_1] : memref<128x128xf32, #tpu.memory_space<vmem>>, vector<128x128xf32>
    %c0_2 = arith.constant 0 : index
    %c0_3 = arith.constant 0 : index
    %4 = vector.load %arg2[%c0_2, %c0_3] : memref<128x128xf32, #tpu.memory_space<vmem>>, vector<128x128xf32>
    %cst = arith.constant dense<0.000000e+00> : vector<128x128xf32>
    %5 = tpu.matmul %4, %3, %cst {dimension_numbers = #tpu.dot_dimension_numbers<[1], [0], [0], [1], [0, 0, 1, 1], [], []>, precision = #tpu.contract_precision<fp32>} : vector<128x128xf32>, vector<128x128xf32>, vector<128x128xf32> -> vector<128x128xf32>
    %c0_4 = arith.constant 0 : index
    %c0_5 = arith.constant 0 : index
    %6 = vector.load %arg3[%c0_4, %c0_5] : memref<128x1xf32, #tpu.memory_space<vmem>>, vector<128x1xf32>
    %c0_6 = arith.constant 0 : index
    %c0_7 = arith.constant 0 : index
    %7 = vector.load %arg6[%c0_6, %c0_7] : memref<1x128xf32, #tpu.memory_space<vmem>>, vector<1x128xf32>
    %8 = vector.broadcast %6 : vector<128x1xf32> to vector<128x128xf32>
    %9 = vector.broadcast %7 : vector<1x128xf32> to vector<128x128xf32>
    %10 = arith.mulf %8, %9 : vector<128x128xf32>
    %11 = arith.addf %5, %10 : vector<128x128xf32>
    %c0_8 = arith.constant 0 : index
    %c0_9 = arith.constant 0 : index
    %12 = vector.load %arg5[%c0_8, %c0_9] : memref<128x128xf32, #tpu.memory_space<vmem>>, vector<128x128xf32>
    tpu.vector_store %arg5[%c0_8, %c0_9], %11 {strides = array<i32>} : memref<128x128xf32, #tpu.memory_space<vmem>>, vector<128x128xf32>,
    %13 = vector.extract_strided_slice %11 {offsets = [127, 0], sizes = [1, 128], strides = [1, 1]} : vector<128x128xf32> to vector<1x128xf32>
    %c0_10 = arith.constant 0 : index
    %c0_11 = arith.constant 0 : index
    %14 = vector.load %arg6[%c0_10, %c0_11] : memref<1x128xf32, #tpu.memory_space<vmem>>, vector<1x128xf32>
    tpu.vector_store %arg6[%c0_10, %c0_11], %13 {strides = array<i32>} : memref<1x128xf32, #tpu.memory_space<vmem>>, vector<1x128xf32>,
    return
  }
  func.func @transform_0(%arg0: i32, %arg1: i32) -> (i32, i32) {
    %c0_i32 = arith.constant 0 : i32
    %c0_i32_0 = arith.constant 0 : i32
    %c0_i32_1 = arith.constant 0 : i32
    return %c0_i32, %c0_i32_0 : i32, i32
  }
  func.func @transform_1(%arg0: i32, %arg1: i32) -> (i32, i32) {
    %c0_i32 = arith.constant 0 : i32
    %c0_i32_0 = arith.constant 0 : i32
    %c0_i32_1 = arith.constant 0 : i32
    return %c0_i32, %c0_i32_0 : i32, i32
  }
  func.func @transform_2(%arg0: i32, %arg1: i32) -> (i32, i32) {
    %c0_i32 = arith.constant 0 : i32
    return %arg1, %arg0 : i32, i32
  }
  func.func @transform_3(%arg0: i32, %arg1: i32) -> (i32, i32) {
    %c0_i32 = arith.constant 0 : i32
    return %arg1, %arg0 : i32, i32
  }
}

</mosaic_0001>

<bundles_post_ra>
// kernel: tpu_custom_call.1
= control target key start
LH: loop header
LB: loop body
LE: loop exit
PB: predicated region body
PF: predicated region fallthrough
CT: control target
= control target key end

     0   :  { %8 = vsyncpa [#allocation4], 0  ;;  %s3713_s0 = inlined_call_operand.vmem [shape: f32[128,128], index: 0, kind: input, shape index: {}]   ;;  %s3714_s1 = inlined_call_operand.vmem [shape: f32[128,1], index: 1, kind: input, shape index: {}]   ;;  %s3715_s2 = inlined_call_operand.hbm [shape: f32[256,256], index: 2, kind: input, shape index: {}]   ;;  %s3716_s3 = inlined_call_operand.hbm [shape: f32[256,256], index: 3, kind: output, shape index: {}]  }
   0x1   :  { %10 = vsyncpa [#allocation4 + $0x1], 0 }
   0x2   :  { %11 = vsyncpa [#allocation5], 0 }
   0x3   :  { %13 = vsyncpa [#allocation5 + $0x1], 0  ;;  %s2857_s12 = smov 0   ;;  %s2859_s13 = smov 0  }
   0x4   :  { %s2861_s14 = smov 0   ;;  %s2863_s15 = smov 0  }
   0x5   :  { %s2865_s16 = smov 0   ;;  %s2867_s17 = smov 0  }
   0x6   :  { %s2869_s18 = smov 0   ;;  %s2871_s19 = smov 0  }
   0x7 LB: > { %s1772_s20 = sadd.s32 4294967295, %s2825_s19   ;;  %s1773_s21 = sadd.s32 4294967294, %s2825_s19   ;;  %s2825_s19 = sphi %s2871_s19, %s19_s19   ;;  %s2821_s18 = sphi %s2869_s18, %s3855_s18   ;;  %s2817_s17 = sphi %s2867_s17, %s3854_s17   ;;  %s2813_s16 = sphi %s2865_s16, %s3853_s16   ;;  %s2809_s15 = sphi %s2863_s15, %s3852_s15   ;;  %s2805_s14 = sphi %s2861_s14, %s3851_s14   ;;  %s2801_s13 = sphi %s2859_s13, %s3850_s13   ;;  %s2797_s12 = sphi %s2857_s12, %s3849_s12  }
   0x8   : > { %s28_s22 = sadd.s32 1, %s2817_s17  ;;  %s31_s23 = sadd.s32 1, %s2821_s18 }
   0x9   : > { %p29_p0 = scmp.ge.s32.totalorder %s28_s22, 2  ;;  %s82_s24 = sadd.s32 1, %s2805_s14 }
   0xa   : > { %p89_p1 = scmp.ne.s32.totalorder %s2805_s14, %s2801_s13  ;;  %p90_p2 = scmp.eq.s32.totalorder %s2825_s19, 0 }
   0xb   : > { %s3857_s22 = smov (%p29_p0, %s28_s22), 0  ;;  %s3859_s23 = smov (!%p29_p0, %s31_s23), %s2821_s18 }
   0xc   : > { %s77_s25 = ssub.s32 %s2817_s17, %s3857_s22  ;;  %p2910_p3 = por %p90_p2, %p89_p1 }
   0xd   : > { %p33_p4 = scmp.ge.s32.totalorder %s3859_s23, 2  ;;  %p95_p5 = scmp.ne.s32.totalorder %s2801_s13, %s2797_s12 }
   0xe   : > { %p96_p6 = scmp.eq.s32.totalorder %s1772_s20, 0  ;;  %p121_p7 = scmp.eq.s32.totalorder %s1772_s20, 3 }
   0xf   : > { %s3861_s23 = smov (%p33_p4, %s3859_s23), 0  ;;  %p127_p10 = scmp.eq.s32.totalorder %s1773_s21, 3 }
  0x10   : > { %3763 = sst [smem:[#allocation9_spill]] %s3861_s23  ;;  %p2918_p8 = por %p96_p6, %p95_p5 }
  0x11   : > { %p2922_p9 = por %p121_p7, %p89_p1  ;;  %s78_s29 = ssub.s32 %s2821_s18, %s3861_s23 }
  0x12   : > { %s79_s30 = sor.u32 %s78_s29, %s77_s25  ;;  %p2928_p12 = por %p127_p10, %p95_p5 }
  0x13   : > { %s3765_s28 = scalar_select %p2922_p9, 1, 0 }
  0x14   : > { %p80_p11 = scmp.eq.s32.totalorder %s79_s30, 0  ;;  %p2621_p13 = scmp.lt.s32.totalorder %s2825_s19, 4 }
  0x15   : > { %s3766_s4 = scalar_select %p2928_p12, 1, 0 }
  0x16   : > { %s153_s5 = sand.u32 1, %s2805_s14   ;;  %s1791_s8 = sshll.u32 %s2817_s17, 5 }
  0x17   : > { %s2935_s6 = scalar_select %p80_p11, %s2805_s14, %s82_s24  }
  0x18   : > { %s1776_s7 = sshll.u32 %s153_s5, 7  ;;  %s163_s9 = sadd.s32 %s2821_s18, %s1791_s8 }
  0x19   : > { %s157_s10 = scalar_lea.vmem [#allocation3], %s1776_s7  ;;  %s1779_s20 = sshll.u32 %s163_s9, 7 }
  0x1a   : > { %s166_s11 = sshll.u32 %s157_s10, 4  ;;  %s2944_s25 = scalar_lea.hbm %s3715_s2, %s1779_s20  ;;  %s2939_s11 = int_to_ptr.vmem [resolvable:$true] %s166_s11 }
  0x1b   : > { %p2948_p0 = pnand %p2621_p13, %p2910_p3  ;;  %s2952_s29 = scalar_lea.sflag [#allocation4], %s153_s5 }
  0x1c   : > { %s2697_s30 = scalar_lea.hbm %s2944_s25, 2048  ;;  %s2702_s7 = scalar_lea.hbm %s3715_s2, 8192 }
  0x1d   : > { %p2698_p1 = scmp.ne.s32.totalorder %s2944_s25, %s2697_s30  ;;  %p2699_p2 = pneg %p2948_p0 }
  0x1e   : > { %p2703_p3 = scmp.lt.u32.totalorder %s2944_s25, %s3715_s2  ;;  %p2704_p6 = scmp.lt.u32.totalorder %s2702_s7, %s2697_s30 }
  0x1f   : > { %p2700_p4 = pnand %p2699_p2, %p2698_p1  ;;  %p2706_p10 = scmp.lt.u32.totalorder %s2697_s30, %s2944_s25 }
  0x20   : > { %p2705_p7 = por %p2704_p6, %p2703_p3 }
  0x21   : > { %p2701_p5 = pneg %p2700_p4 }
  0x22   : > { %p2707_p11 = por %p2706_p10, %p2705_p7 }
  0x24   : > { %p2708_p13 = pnand %p2707_p11, %p2701_p5 }
  0x26   : > { %2711 = shalt.err (!%p2708_p13)
}
  0x27   : > { %s2712_s5 = scalar_lea.vmem %s2939_s11, 2048  ;;  %s2827_s10 = smov [#allocation3]  }
  0x28   : > { %p2713_p1 = scmp.ne.s32.totalorder %s2939_s11, %s2712_s5  ;;  %s2717_s20 = sshll.u32 %s2827_s10, 4  ;;  %s2718_s20 = int_to_ptr.vmem [resolvable:$false] %s2717_s20 }
  0x29   : > { %s2719_s21 = scalar_lea.vmem %s2718_s20, 4096  ;;  %p2720_p9 = scmp.lt.s32.totalorder %s2939_s11, %s2718_s20 }
  0x2a   : > { %p2715_p4 = pnand %p2713_p1, %p2699_p2  ;;  %p2721_p3 = scmp.lt.s32.totalorder %s2719_s21, %s2712_s5 }
  0x2c   : > { %p2716_p12 = pneg %p2715_p4  ;;  %p2722_p6 = por %p2721_p3, %p2720_p9 }
  0x2e   : > { %p2723_p7 = pnand %p2722_p6, %p2716_p12 }
  0x30   : > { %2726 = shalt.err (!%p2723_p7)
}
  0x31   : > { %s2828_s30 = smov 256   ;;  %s2829_s23 = smov 128  }
  0x32   : > { %s2830_s26 = smov 8   ;;  %p1780_p2 = scmp.ge.s32.totalorder %s2825_s19, 1 }
  0x33   : > { %2616 = dma.hbm_to_vmem [thread:$0]  (!%p2948_p0), %s2944_s25, 2048, %s2939_s11, %s2952_s29, %s2828_s30, %s2829_s23, %s2830_s26  }
  0x34   : > { %p174_p5 = scmp.lt.s32.totalorder %s2825_s19, 5 }
  0x36   : > { %p175_p10 = pnand %p1780_p2, %p174_p5 }
  0x38   : > { %178 = sbr.rel (%p175_p10) target bundleno = 440 (0x1b8), region = 32 }
  0x3f   : > { %s2983_s7 = sand.u32 1, %s2801_s13  }
  0x40   : > { %s1781_s8 = sshll.u32 %s2983_s7, 7  ;;  %s181_s9 = scalar_lea.sflag [#allocation4], %s2983_s7 }
  0x41   : > { %s2987_s5 = scalar_lea.vmem [#allocation3], %s1781_s8 }
  0x42   : > { %2788 = dma.done.wait (%p2918_p8), %s181_s9, 2048  }
  0x43   : > { %2790 = vsyncadd (%p2918_p8), %s181_s9, 4294965248  ;;  %s2993_s11 = scalar_lea.vmem [#allocation6], %s1781_s8  ;;  %p1783_p9 = scmp.ne.s32.totalorder %s2809_s15, 0 }
  0x44   : > { %v2831_v0 = vmov (!%p1783_p9), 0.5  }
  0x45   : > { %212 = sbr.rel (%p1783_p9) target bundleno = 76 (0x4c), region = 40  ;;  %213 = vst [vmem:[#allocation2] sm:$0x1] (!%p1783_p9), %v2831_v0 }
  0x4c PF: > { %v214_v1 = vld [vmem:[%s2987_s5] sm:$0xff]  ;;  %v215_v2 = vld [vmem:[%s2987_s5 + $0x8] sm:$0xff]  ;;  %v216_v3 = vld [vmem:[%s2987_s5 + $0x10] sm:$0xff]  ;;  %s1669_s10 = scalar_lea.sflag [#allocation5], %s2983_s7  ;;  %p3846_p12 = scmp.ne.s32.totalorder %s3765_s28, 0 }
  0x4d   : > { %v366_v4 = vand.u32 4294901760, %v214_v1  ;;  %v369_v5 = vand.u32 4294901760, %v215_v2  ;;  %v217_v6 = vld [vmem:[%s2987_s5 + $0x18] sm:$0xff]  ;;  %v372_v7 = vand.u32 4294901760, %v216_v3  ;;  %v3001_v8 = vld [vmem:[%s2987_s5 + $0x20] sm:$0xff]  ;;  %v3004_v9 = vld [vmem:[%s2987_s5 + $0x28] sm:$0xff] }
  0x4e   : > { %v375_v10 = vand.u32 4294901760, %v217_v6  ;;  %v378_v12 = vand.u32 4294901760, %v3001_v8  ;;  %v381_v13 = vand.u32 4294901760, %v3004_v9  ;;  %v3013_v15 = vld [vmem:[%s2987_s5 + $0x30] sm:$0xff]  ;;  %v3016_v16 = vld [vmem:[%s2987_s5 + $0x38] sm:$0xff]  ;;  %v231_v22 = vld [vmem:[%s3713_s0 + $0x8] sm:$0xff] }
  0x4f   : > { %v3006_v11 = vpack.c.bf16 %v369_v5, %v366_v4  ;;  %v230_v17 = vld [vmem:[%s3713_s0] sm:$0xff]  ;;  %v384_v20 = vand.u32 4294901760, %v3013_v15  ;;  %v387_v21 = vand.u32 4294901760, %v3016_v16  ;;  %v3044_v24 = vld [vmem:[%s2987_s5 + $0x48] sm:$0xff]  ;;  %v3052_v27 = vand.u32 4294901760, %v231_v22  ;;  %v3065_v31 = vld [vmem:[%s2987_s5 + $0x50] sm:$0xff] }
  0x50   : > { %v3010_v14 = vpack.c.bf16 %v375_v10, %v372_v7  ;;  %v3025_v18 = vand.u32 4294901760, %v230_v17  ;;  %v3033_v19 = vpack.c.bf16 %v381_v13, %v378_v12  ;;  %v3041_v23 = vld [vmem:[%s2987_s5 + $0x40] sm:$0xff]  ;;  %v3727_v30 = vand.u32 4294901760, %v3044_v24  ;;  %v232_v32 = vld [vmem:[%s3713_s0 + $0x10] sm:$0xff]  ;;  %v3071_v33 = vld [vmem:[%s2987_s5 + $0x58] sm:$0xff]  ;;  %s2833_s21 = smov [#allocation6]  }
  0x51   : > { %2322 = vmatprep.subr.bf16.mxu1 %v3006_v11  ;;  %2418 = vmatprep.subr.bf16.mxu0 %v3006_v11  ;;  %v3060_v28 = vpack.c.bf16 %v387_v21, %v384_v20  ;;  %v3729_v29 = vand.u32 4294901760, %v3041_v23  ;;  %v233_v35 = vld [vmem:[%s3713_s0 + $0x18] sm:$0xff]  ;;  %v3077_v36 = vsub.f32 %v214_v1, %v366_v4  ;;  %v3079_v37 = vsub.f32 %v215_v2, %v369_v5  ;;  %v3085_v39 = vld [vmem:[%s2987_s5 + $0x60] sm:$0xff]  ;;  %v3088_v40 = vld [vmem:[%s2987_s5 + $0x68] sm:$0xff]  ;;  %s2731_s30 = sshll.u32 %s2833_s21, 4  ;;  %s2732_s30 = int_to_ptr.vmem [resolvable:$false] %s2731_s30 }
  0x52   : > { %2324 = vmatpush3.bf16.msra.mxu1 %v3006_v11  ;;  %2420 = vmatpush3.bf16.msra.mxu0 %v3006_v11  ;;  %v3047_v25 = vsub.f32 %v230_v17, %v3025_v18  ;;  %v3726_v38 = vand.u32 4294901760, %v3065_v31  ;;  %v3091_v42 = vsub.f32 %v231_v22, %v3052_v27  ;;  %v3093_v43 = vand.u32 4294901760, %v232_v32  ;;  %v3105_v46 = vld [vmem:[%s2987_s5 + $0x70] sm:$0xff]  ;;  %v3108_v47 = vld [vmem:[%s2987_s5 + $0x78] sm:$0xff]  ;;  %v235_v56 = vld [vmem:[%s3713_s0 + $0x28] sm:$0xff]  ;;  %s1792_s5 = sshll.u32 %s2809_s15, 5 }
  0x53   : > { %2326 = vmatprep.subr.bf16.mxu1 %v3010_v14  ;;  %2422 = vmatprep.subr.bf16.mxu0 %v3010_v14  ;;  %3769 = vst [vmem:[#allocation11_spill] sm:$0xff] %v3060_v28  ;;  %v3101_v44 = vpack.c.bf16 %v3727_v30, %v3729_v29  ;;  %v3724_v45 = vand.u32 4294901760, %v3071_v33  ;;  %v3110_v48 = vand.u32 4294901760, %v233_v35  ;;  %v3112_v49 = vsub.f32 %v216_v3, %v372_v7  ;;  %v234_v51 = vld [vmem:[%s3713_s0 + $0x20] sm:$0xff]  ;;  %v236_v3 = vld [vmem:[%s3713_s0 + $0x30] sm:$0xff]  ;;  %s1681_s27 = sadd.s32 %s2813_s16, %s1792_s5  ;;  %s1684_s16 = sshll.u32 %s2993_s11, 4  ;;  %s3657_s16 = int_to_ptr.vmem [resolvable:$true] %s1684_s16 }
  0x54   : > { %3768 = vst [vmem:[#allocation10_spill] sm:$0xff] %v3047_v25  ;;  %v448_v26 = vand.u32 4294901760, %v3047_v25  ;;  %3770 = vst [vmem:[#allocation12_spill] sm:$0xff] %v3091_v42  ;;  %v3114_v50 = vsub.f32 %v217_v6, %v375_v10  ;;  %v3722_v52 = vand.u32 4294901760, %v3085_v39  ;;  %v3721_v53 = vand.u32 4294901760, %v3088_v40  ;;  %v237_v10 = vld [vmem:[%s3713_s0 + $0x38] sm:$0xff]  ;;  %p2734_p13 = scmp.lt.s32.totalorder %s3657_s16, %s2732_s30 }
  0x55   : > { %3771 = vst [vmem:[#allocation13_spill] sm:$0xff] %v3101_v44  ;;  %v609_v54 = vand.u32 4294901760, %v3077_v36  ;;  %v616_v55 = vand.u32 4294901760, %v3079_v37  ;;  %v3720_v57 = vand.u32 4294901760, %v3105_v46  ;;  %v3719_v58 = vand.u32 4294901760, %v3108_v47  ;;  %s1788_s15 = sshll.u32 %s1681_s27, 7 }
  0x56   : > { %2328 = vmatpush3.bf16.msra.mxu1 %v3010_v14  ;;  %2424 = vmatpush3.bf16.msra.mxu0 %v3010_v14  ;;  %v449_v34 = vsub.f32 %v3047_v25, %v448_v26  ;;  %v3723_v59 = vand.u32 4294901760, %v3091_v42  ;;  %v3132_v60 = vsub.f32 %v232_v32, %v3093_v43  ;;  %v3140_v61 = vpack.c.bf16 %v3724_v45, %v3726_v38  ;;  %s3655_s29 = scalar_lea.hbm %s3716_s3, %s1788_s15  ;;  %s2727_s20 = scalar_lea.vmem %s3657_s16, 2048 }
  0x57   : > { %2330 = vmatprep.subr.bf16.mxu1 %v3033_v19  ;;  %2426 = vmatprep.subr.bf16.mxu0 %v3033_v19  ;;  %v3143_v62 = vsub.f32 %v233_v35, %v3110_v48  ;;  %v623_v63 = vand.u32 4294901760, %v3112_v49  ;;  %v3146_v0 = vand.u32 4294901760, %v234_v51  ;;  %v630_v1 = vand.u32 4294901760, %v3114_v50  ;;  %p2728_p8 = scmp.ne.s32.totalorder %s3657_s16, %s2727_s20  ;;  %s2733_s23 = scalar_lea.vmem %s2732_s30, 4096 }
  0x58   : > { %2185 = vmatprep.mubr.f32.mxu0 %v448_v26  ;;  %v450_v41 = vand.u32 4294901760, %v449_v34  ;;  %3772 = vst [vmem:[#allocation14_spill] sm:$0xff] %v3132_v60  ;;  %3773 = vst [vmem:[#allocation15_spill] sm:$0xff] %v3140_v61  ;;  %v3149_v2 = vand.u32 4294901760, %v235_v56  ;;  %v610_v4 = vsub.f32 %v3077_v36, %v609_v54  ;;  %v617_v5 = vsub.f32 %v3079_v37, %v616_v55  ;;  %p2735_p1 = scmp.lt.s32.totalorder %s2733_s23, %s2727_s20 }
  0x59   : > { %3774 = vst [vmem:[#allocation16_spill] sm:$0xff] %v3143_v62  ;;  %v3159_v6 = vsub.f32 %v3001_v8, %v378_v12  ;;  %v3164_v7 = vsub.f32 %v3004_v9, %v381_v13  ;;  %v3175_v17 = vpack.c.bf16 %v3721_v53, %v3722_v52  ;;  %v3181_v8 = vpack.c.bf16 %v3719_v58, %v3720_v57  ;;  %p2729_p0 = pnand %p2728_p8, %p3846_p12 }
  0x5a   : > { %2332 = vmatpush3.bf16.msra.mxu1 %v3033_v19  ;;  %2428 = vmatpush3.bf16.msra.mxu0 %v3033_v19  ;;  %v3186_v9 = vsub.f32 %v3091_v42, %v3723_v59  ;;  %v3725_v12 = vand.u32 4294901760, %v3132_v60  ;;  %v3728_v13 = vand.u32 4294901760, %v3143_v62  ;;  %v624_v22 = vsub.f32 %v3112_v49, %v623_v63  ;;  %p2736_p4 = por %p2735_p1, %p2734_p13 }
  0x5b   : > { %2334 = vmatprep.subr.bf16.mxu1 %v3060_v28  ;;  %2430 = vmatprep.subr.bf16.mxu0 %v3060_v28  ;;  %3775 = vst [vmem:[#allocation17_spill] sm:$0xff] %v3175_v17  ;;  %3776 = vst [vmem:[#allocation18_spill] sm:$0xff] %v3181_v8  ;;  %v3194_v26 = vsub.f32 %v234_v51, %v3146_v0  ;;  %v3196_v32 = vand.u32 4294901760, %v236_v3  ;;  %v631_v34 = vsub.f32 %v3114_v50, %v630_v1  ;;  %p2730_p11 = pneg %p2729_p0 }
  0x5c   : > { %2017 = vmatprep.mubr.f32.mxu1 %v450_v41  ;;  %v3200_v35 = vsub.f32 %v235_v56, %v3149_v2  ;;  %v3202_v41 = vand.u32 4294901760, %v237_v10  ;;  %v3207_v58 = vsub.f32 %v3013_v15, %v384_v20  ;;  %v611_v57 = vand.u32 4294901760, %v610_v4  ;;  %v238_v20 = vld [vmem:[%s3713_s0 + $0x40] sm:$0xff] }
  0x5d   : > { %3777 = vst [vmem:[#allocation19_spill] sm:$0xff] %v3194_v26  ;;  %3778 = vst [vmem:[#allocation20_spill] sm:$0xff] %v3196_v32  ;;  %v618_v53 = vand.u32 4294901760, %v617_v5  ;;  %v637_v52 = vand.u32 4294901760, %v3159_v6  ;;  %v644_v51 = vand.u32 4294901760, %v3164_v7  ;;  %v460_v56 = vand.u32 4294901760, %v3186_v9  ;;  %p2737_p3 = pnand %p2736_p4, %p2730_p11 }
  0x5e   : > { %2336 = vmatpush3.bf16.msra.mxu1 %v3060_v28  ;;  %2432 = vmatpush3.bf16.msra.mxu0 %v3060_v28  ;;  %3779 = vst [vmem:[#allocation21_spill] sm:$0xff] %v3200_v35  ;;  %3780 = vst [vmem:[#allocation22_spill] sm:$0xff] %v3202_v41  ;;  %v3214_v59 = vpack.c.bf16 %v616_v55, %v609_v54  ;;  %v3219_v45 = vsub.f32 %v3132_v60, %v3725_v12  ;;  %v625_v55 = vand.u32 4294901760, %v624_v22 }
  0x5f   : > { %2338 = vmatprep.subr.bf16.mxu1 %v3101_v44  ;;  %2434 = vmatprep.subr.bf16.mxu0 %v3101_v44  ;;  %v3224_v15 = vsub.f32 %v3016_v16, %v387_v21  ;;  %v3234_v54 = vsub.f32 %v3143_v62, %v3728_v13  ;;  %v3733_v4 = vand.u32 4294901760, %v3194_v26  ;;  %v3238_v5 = vsub.f32 %v236_v3, %v3196_v32 }
  0x60   : > { %v632_v16 = vand.u32 4294901760, %v631_v34  ;;  %v3242_v9 = vsub.f32 %v237_v10, %v3202_v41  ;;  %v2353_v38 = vpack.c.bf16 %v618_v53, %v611_v57  ;;  %v638_v30 = vsub.f32 %v3159_v6, %v637_v52  ;;  %v239_v10 = vld [vmem:[%s3713_s0 + $0x48] sm:$0xff] }
  0x61   : > { %3781 = vst [vmem:[#allocation23_spill] sm:$0xff] %v3238_v5  ;;  %v645_v13 = vsub.f32 %v3164_v7, %v644_v51  ;;  %v3247_v29 = vand.u32 4294901760, %v238_v20  ;;  %v470_v3 = vand.u32 4294901760, %v3219_v45  ;;  %v658_v22 = vand.u32 4294901760, %v3224_v15 }
  0x62   : > { %2340 = vmatpush3.bf16.msra.mxu1 %v3101_v44  ;;  %2436 = vmatpush3.bf16.msra.mxu0 %v3101_v44  ;;  %3782 = vst [vmem:[#allocation24_spill] sm:$0xff] %v3242_v9  ;;  %v3784_v53 = vand.u32 4294901760, %v3041_v23  ;;  %v3785_v34 = vand.u32 4294901760, %v3044_v24  ;;  %v480_v45 = vand.u32 4294901760, %v3234_v54  ;;  %v2453_v21 = vpack.c.bf16 %v630_v1, %v623_v63 }
  0x63   : > { %2342 = vmatprep.subr.bf16.mxu1 %v3140_v61  ;;  %2438 = vmatprep.subr.bf16.mxu0 %v3140_v61  ;;  %3783 = vst [vmem:[#allocation25_spill] sm:$0xff] %v3247_v29  ;;  %v3272_v25 = vsub.f32 %v3194_v26, %v3733_v4  ;;  %v3787_v63 = vand.u32 4294901760, %v3207_v58  ;;  %v639_v4 = vand.u32 4294901760, %v638_v30  ;;  %v3290_v44 = vand.u32 4294901760, %v239_v10  ;;  %v241_v30 = vld [vmem:[%s3713_s0 + $0x58] sm:$0xff] }
  0x64   : > { %v3259_v57 = vsub.f32 %v3041_v23, %v3784_v53  ;;  %v3264_v12 = vsub.f32 %v3044_v24, %v3785_v34  ;;  %v240_v53 = vld [vmem:[%s3713_s0 + $0x50] sm:$0xff]  ;;  %v2357_v24 = vpack.c.bf16 %v632_v16, %v625_v55  ;;  %v3786_v34 = vand.u32 4294901760, %v3200_v35 }
  0x65   : > { %v652_v1 = vsub.f32 %v3207_v58, %v3787_v63  ;;  %v3288_v23 = vsub.f32 %v238_v20, %v3247_v29  ;;  %v659_v55 = vsub.f32 %v3224_v15, %v658_v22  ;;  %v3297_v54 = vand.u32 4294901760, %v240_v53 }
  0x66   : > { %2344 = vmatpush3.bf16.msra.mxu1 %v3140_v61  ;;  %2440 = vmatpush3.bf16.msra.mxu0 %v3140_v61  ;;  %v646_v61 = vand.u32 4294901760, %v645_v13  ;;  %v490_v13 = vand.u32 4294901760, %v3272_v25  ;;  %v3304_v20 = vpack.c.bf16 %v644_v51, %v637_v52  ;;  %v3788_v63 = vand.u32 4294901760, %v3238_v5 }
  0x67   : > { %2346 = vmatprep.subr.bf16.mxu1 %v3175_v17  ;;  %2442 = vmatprep.subr.bf16.mxu0 %v3175_v17  ;;  %v3790_v41 = vand.u32 4294901760, %v3242_v9  ;;  %v653_v25 = vand.u32 4294901760, %v652_v1  ;;  %v3791_v52 = vand.u32 4294901760, %v3071_v33  ;;  %v3336_v1 = vand.u32 4294901760, %v241_v30 }
  0x69   : > { %v3320_v28 = vsub.f32 %v3242_v9, %v3790_v41  ;;  %v3325_v51 = vsub.f32 %v3071_v33, %v3791_v52  ;;  %v3334_v41 = vsub.f32 %v239_v10, %v3290_v44  ;;  %v660_v33 = vand.u32 4294901760, %v659_v55 }
  0x6a   : > { %2348 = vmatpush3.bf16.msra.mxu1 %v3175_v17  ;;  %2444 = vmatpush3.bf16.msra.mxu0 %v3175_v17  ;;  %v3281_v17 = vsub.f32 %v3200_v35, %v3786_v34  ;;  %v3789_v34 = vand.u32 4294901760, %v3065_v31  ;;  %v3793_v52 = vand.u32 4294901760, %v3259_v57 }
  0x6b   : > { %2350 = vmatprep.subr.bf16.mxu1 %v3181_v8  ;;  %2446 = vmatprep.subr.bf16.mxu0 %v3181_v8 }
  0x6c   : > { %v3314_v16 = vsub.f32 %v3065_v31, %v3789_v34  ;;  %v500_v29 = vand.u32 4294901760, %v3281_v17  ;;  %v3792_v31 = vand.u32 4294901760, %v3091_v42  ;;  %v2361_v17 = vpack.c.bf16 %v646_v61, %v639_v4  ;;  %v243_v4 = vld [vmem:[%s3713_s0 + $0x68] sm:$0xff] }
  0x6d   : > { %v666_v32 = vsub.f32 %v3259_v57, %v3793_v52  ;;  %v3346_v61 = vsub.f32 %v240_v53, %v3297_v54  ;;  %v3796_v52 = vand.u32 4294901760, %v3085_v39  ;;  %v520_v53 = vand.u32 4294901760, %v3320_v28 }
  0x6e   : > { %2352 = vmatpush3.bf16.msra.mxu1 %v3181_v8  ;;  %2448 = vmatpush3.bf16.msra.mxu0 %v3181_v8  ;;  %v3309_v8 = vsub.f32 %v3238_v5, %v3788_v63  ;;  %v242_v63 = vld [vmem:[%s3713_s0 + $0x60] sm:$0xff]  ;;  %v3800_v28 = vand.u32 4294901760, %v3288_v23 }
  0x6f   : > { %2354 = vmatprep.subr.bf16.mxu1 %v2353_v38  ;;  %2450 = vmatprep.subr.bf16.mxu0 %v3214_v59  ;;  %v3355_v55 = vand.u32 4294901760, %v242_v63 }
  0x71   : > { %2018 = vmatmul.mubr.f32.vlgmr.msra.gmra.mrb[0].mxu1 %v460_v56  ;;  %2186 = vmatmul.mubr.f32.vlgmr.msra.gmra.mrb[0].mxu0 %v3792_v31  ;;  %v3794_v56 = vand.u32 4294901760, %v3264_v12 }
  0x72   : > { %2356 = vmatpush3.bf16.msra.mxu1 %v2353_v38  ;;  %2452 = vmatpush3.bf16.msra.mxu0 %v3214_v59  ;;  %v3795_v38 = vand.u32 4294901760, %v3132_v60  ;;  %v510_v59 = vand.u32 4294901760, %v3309_v8  ;;  %v3798_v8 = vand.u32 4294901760, %v3088_v40  ;;  %v244_v60 = vld [vmem:[%s3713_s0 + $0x70] sm:$0xff] }
  0x73   : > { %v673_v31 = vsub.f32 %v3264_v12, %v3794_v56  ;;  %2020 = vmatprep.mubr.f32.mxu1 %v470_v3  ;;  %v3360_v56 = vsub.f32 %v3085_v39, %v3796_v52  ;;  %2358 = vmatprep.subr.bf16.mxu1 %v2357_v24  ;;  %v3797_v3 = vand.u32 4294901760, %v3207_v58  ;;  %v3799_v39 = vand.u32 4294901760, %v3143_v62 }
  0x74   : > { %2188 = vmatprep.mubr.f32.mxu0 %v3795_v38  ;;  %2454 = vmatprep.subr.bf16.mxu0 %v2453_v21  ;;  %v3369_v10 = vsub.f32 %v3088_v40, %v3798_v8  ;;  %v529_v52 = vsub.f32 %v3288_v23, %v3800_v28  ;;  %v3383_v38 = vand.u32 4294901760, %v243_v4  ;;  %v2365_v40 = vpack.c.bf16 %v660_v33, %v653_v25 }
  0x75   : > { %v2461_v34 = vpack.c.bf16 %v658_v22, %v3797_v3  ;;  %2021 = vmatmul.mubr.f32.gmra.mrb[2].mxu1 %v480_v45  ;;  %2189 = vmatmul.mubr.f32.gmra.mrb[2].mxu0 %v3799_v39  ;;  %v3381_v3 = vsub.f32 %v241_v30, %v3336_v1  ;;  %v667_v8 = vand.u32 4294901760, %v666_v32  ;;  %v674_v42 = vand.u32 4294901760, %v673_v31  ;;  %v245_v39 = vld [vmem:[%s3713_s0 + $0x78] sm:$0xff] }
  0x76   : > { %3802 = vst [vmem:[#allocation27_spill] sm:$0xff] %v3383_v38  ;;  %2360 = vmatpush3.bf16.msra.mxu1 %v2357_v24  ;;  %2456 = vmatpush3.bf16.msra.mxu0 %v2453_v21  ;;  %v3803_v28 = vand.u32 4294901760, %v3194_v26  ;;  %v3804_v30 = vand.u32 4294901760, %v3314_v16  ;;  %v3395_v24 = vsub.f32 %v242_v63, %v3355_v55  ;;  %v3398_v21 = vand.u32 4294901760, %v244_v60 }
  0x77   : > { %3801 = vst [vmem:[#allocation26_spill] sm:$0xff] %v3381_v3  ;;  %2023 = vmatprep.mubr.f32.mxu1 %v490_v13  ;;  %2362 = vmatprep.subr.bf16.mxu1 %v2361_v17  ;;  %v3807_v25 = vand.u32 4294901760, %v3325_v51  ;;  %v700_v33 = vand.u32 4294901760, %v3369_v10  ;;  %v3808_v31 = vand.u32 4294901760, %v3105_v46  ;;  %v3809_v63 = vand.u32 4294901760, %v3108_v47 }
  0x78   : > { %2191 = vmatprep.mubr.f32.mxu0 %v3803_v28  ;;  %v680_v22 = vsub.f32 %v3314_v16, %v3804_v30  ;;  %3805 = vst [vmem:[#allocation28_spill] sm:$0xff] %v3395_v24  ;;  %3806 = vst [vmem:[#allocation29_spill] sm:$0xff] %v3398_v21  ;;  %2458 = vmatprep.subr.bf16.mxu0 %v3304_v20  ;;  %v3810_v32 = vand.u32 4294901760, %v3200_v35  ;;  %v3811_v45 = vand.u32 4294901760, %v3334_v41  ;;  %v558_v26 = vand.u32 4294901760, %v3381_v3 }
  0x79   : > { %v687_v13 = vsub.f32 %v3325_v51, %v3807_v25  ;;  %v3408_v28 = vsub.f32 %v3105_v46, %v3808_v31  ;;  %v3413_v30 = vsub.f32 %v3108_v47, %v3809_v63  ;;  %2024 = vmatmul.mubr.f32.gmra.mrb[4].mxu1 %v500_v29  ;;  %v3422_v62 = vsub.f32 %v243_v4, %v3383_v38 }
  0x7a   : > { %2192 = vmatmul.mubr.f32.gmra.mrb[4].mxu0 %v3810_v32  ;;  %v539_v25 = vsub.f32 %v3334_v41, %v3811_v45  ;;  %v3424_v46 = vand.u32 4294901760, %v245_v39  ;;  %2364 = vmatpush3.bf16.msra.mxu1 %v2361_v17  ;;  %v530_v47 = vand.u32 4294901760, %v529_v52  ;;  %v2369_v31 = vpack.c.bf16 %v674_v42, %v667_v8 }
  0x7b   : > { %3812 = vst [vmem:[#allocation30_spill] sm:$0xff] %v3422_v62  ;;  %2460 = vmatpush3.bf16.msra.mxu0 %v3304_v20  ;;  %v3813_v29 = vand.u32 4294901760, %v3259_v57  ;;  %v3814_v32 = vand.u32 4294901760, %v3264_v12  ;;  %v3815_v35 = vand.u32 4294901760, %v3346_v61  ;;  %2026 = vmatprep.mubr.f32.mxu1 %v510_v59  ;;  %v3816_v4 = vand.u32 4294901760, %v3238_v5 }
  0x7c   : > { %v681_v38 = vand.u32 4294901760, %v680_v22  ;;  %v568_v17 = vand.u32 4294901760, %v3395_v24  ;;  %v3817_v20 = vand.u32 4294901760, %v3360_v56  ;;  %v3441_v52 = vsub.f32 %v244_v60, %v3398_v21  ;;  %2366 = vmatprep.subr.bf16.mxu1 %v2365_v40  ;;  %2462 = vmatprep.subr.bf16.mxu0 %v2461_v34 }
  0x7d   : > { %v2465_v63 = vpack.c.bf16 %v3814_v32, %v3813_v29  ;;  %v549_v45 = vsub.f32 %v3346_v61, %v3815_v35  ;;  %2194 = vmatprep.mubr.f32.mxu0 %v3816_v4  ;;  %v688_v8 = vand.u32 4294901760, %v687_v13  ;;  %v701_v29 = vsub.f32 %v3369_v10, %v700_v33  ;;  %2027 = vmatmul.mubr.f32.gmra.mrb[6].mxu1 %v520_v53 }
  0x7e   : > { %v694_v42 = vsub.f32 %v3360_v56, %v3817_v20  ;;  %v707_v35 = vand.u32 4294901760, %v3408_v28  ;;  %v714_v59 = vand.u32 4294901760, %v3413_v30  ;;  %v3818_v22 = vand.u32 4294901760, %v3242_v9  ;;  %2368 = vmatpush3.bf16.msra.mxu1 %v2365_v40  ;;  %2029 = vmatprep.mubr.f32.mxu1 %v530_v47 }
  0x7f   : > { %v540_v32 = vand.u32 4294901760, %v539_v25  ;;  %v559_v4 = vsub.f32 %v3381_v3, %v558_v26  ;;  %v578_v20 = vand.u32 4294901760, %v3422_v62  ;;  %v3451_v60 = vsub.f32 %v245_v39, %v3424_v46  ;;  %2464 = vmatpush3.bf16.msra.mxu0 %v2461_v34  ;;  %2370 = vmatprep.subr.bf16.mxu1 %v2369_v31 }
  0x80   : > { %2195 = vmatmul.mubr.f32.gmra.mrb[6].mxu0 %v3818_v22  ;;  %v550_v13 = vand.u32 4294901760, %v549_v45  ;;  %v3819_v5 = vand.u32 4294901760, %v3288_v23  ;;  %v3820_v53 = vand.u32 4294901760, %v3314_v16  ;;  %v3821_v9 = vand.u32 4294901760, %v3325_v51  ;;  %2466 = vmatprep.subr.bf16.mxu0 %v2465_v63 }
  0x81   : > { %v569_v25 = vsub.f32 %v3395_v24, %v568_v17  ;;  %v695_v3 = vand.u32 4294901760, %v694_v42  ;;  %v588_v21 = vand.u32 4294901760, %v3441_v52  ;;  %v2373_v39 = vpack.c.bf16 %v688_v8, %v681_v38  ;;  %2030 = vmatmul.mubr.f32.gmra.mrb[8].mxu1 %v540_v32 }
  0x82   : > { %2197 = vmatprep.mubr.f32.mxu0 %v3819_v5  ;;  %v2469_v22 = vpack.c.bf16 %v3821_v9, %v3820_v53  ;;  %v702_v40 = vand.u32 4294901760, %v701_v29  ;;  %v708_v34 = vsub.f32 %v3408_v28, %v707_v35  ;;  %v715_v47 = vsub.f32 %v3413_v30, %v714_v59  ;;  %2372 = vmatpush3.bf16.msra.mxu1 %v2369_v31 }
  0x83   : > { %v3822_v5 = vand.u32 4294901760, %v3334_v41  ;;  %v560_v45 = vand.u32 4294901760, %v559_v4  ;;  %v579_v9 = vsub.f32 %v3422_v62, %v578_v20  ;;  %v598_v53 = vand.u32 4294901760, %v3451_v60  ;;  %2468 = vmatpush3.bf16.msra.mxu0 %v2465_v63  ;;  %2032 = vmatprep.mubr.f32.mxu1 %v550_v13 }
  0x84   : > { %v3823_v42 = vand.u32 4294901760, %v3346_v61  ;;  %v570_v38 = vand.u32 4294901760, %v569_v25  ;;  %v589_v8 = vsub.f32 %v3441_v52, %v588_v21  ;;  %2374 = vmatprep.subr.bf16.mxu1 %v2373_v39  ;;  %2470 = vmatprep.subr.bf16.mxu0 %v2469_v22  ;;  %v2377_v29 = vpack.c.bf16 %v702_v40, %v695_v3  ;;  %v254_v40 = vld [vmem:[%s3714_s1 + $0x40] sm:$0xff] }
  0x85   : > { %2198 = vmatmul.mubr.f32.gmra.mrb[8].mxu0 %v3822_v5  ;;  %v3824_v32 = vand.u32 4294901760, %v3360_v56  ;;  %v709_v4 = vand.u32 4294901760, %v708_v34  ;;  %v716_v24 = vand.u32 4294901760, %v715_v47  ;;  %2033 = vmatmul.mubr.f32.gmra.mrb[10].mxu1 %v560_v45  ;;  %v580_v62 = vand.u32 4294901760, %v579_v9  ;;  %v256_v34 = vld [vmem:[%s3714_s1 + $0x50] sm:$0xff]  ;;  %v3843_v47 = vld [vmem:[#allocation26_spill] sm:$0xff] }
  0x86   : > { %2200 = vmatprep.mubr.f32.mxu0 %v3823_v42  ;;  %v599_v31 = vsub.f32 %v3451_v60, %v598_v53  ;;  %2376 = vmatpush3.bf16.msra.mxu1 %v2373_v39  ;;  %v590_v63 = vand.u32 4294901760, %v589_v8  ;;  %v2477_v25 = vpack.c.bf16 %v714_v59, %v707_v35  ;;  %v3838_v35 = vld [vmem:[#allocation16_spill] sm:$0xff]  ;;  %v3839_v59 = vld [vmem:[#allocation19_spill] sm:$0xff] }
  0x87   : > { %v2473_v5 = vpack.c.bf16 %v700_v33, %v3824_v32  ;;  %2472 = vmatpush3.bf16.msra.mxu0 %v2469_v22  ;;  %2035 = vmatprep.mubr.f32.mxu1 %v570_v38  ;;  %v2381_v13 = vpack.c.bf16 %v716_v24, %v709_v4  ;;  %v2832_v24 = vmov 0   ;;  %v246_v33 = vld [vmem:[%s3714_s1] sm:$0xff]  ;;  %v3841_v22 = vld [vmem:[#allocation23_spill] sm:$0xff]  ;;  %v3842_v39 = vld [vmem:[#allocation24_spill] sm:$0xff] }
  0x88   : > { %2378 = vmatprep.subr.bf16.mxu1 %v2377_v29  ;;  %v600_v3 = vand.u32 4294901760, %v599_v31  ;;  %2696 = vset.pattern.permute.xlu1 %v2832_v24  ;;  %v3617_v32 = vld [vmem:[#allocation2] ss:$0 sm:$0xff] }
  0x89   : > { %2201 = vmatmul.mubr.f32.gmra.mrb[10].mxu0 %v558_v26  ;;  %2474 = vmatprep.subr.bf16.mxu0 %v2473_v5  ;;  %v2385_v26 = vpack.c.bf16 %v3079_v37, %v3077_v36  ;;  %v2393_v36 = vpack.c.bf16 %v3164_v7, %v3159_v6  ;;  %v3825_v37 = vld [vmem:[#allocation20_spill] sm:$0xff]  ;;  %v2405_v6 = vpack.c.bf16 %v3325_v51, %v3314_v16  ;;  %v3830_v7 = vld [vmem:[#allocation15_spill] sm:$0xff]  ;;  %v3833_v51 = vld [vmem:[#allocation29_spill] sm:$0xff] }
  0x8a   : > { %2203 = vmatprep.mubr.f32.mxu0 %v568_v17  ;;  %2036 = vmatmul.mubr.f32.gmra.mrb[12].mxu1 %v580_v62  ;;  %v2389_v62 = vpack.c.bf16 %v3114_v50, %v3112_v49  ;;  %v2401_v49 = vpack.c.bf16 %v3264_v12, %v3259_v57  ;;  %v3827_v50 = vld [vmem:[#allocation22_spill] sm:$0xff]  ;;  %v2409_v12 = vpack.c.bf16 %v3369_v10, %v3360_v56  ;;  %v3832_v16 = vld [vmem:[#allocation27_spill] sm:$0xff] }
  0x8b   : > { %2380 = vmatpush3.bf16.msra.mxu1 %v2377_v29  ;;  %2476 = vmatpush3.bf16.msra.mxu0 %v2473_v5  ;;  %v2413_v57 = vpack.c.bf16 %v3413_v30, %v3408_v28  ;;  %v3834_v10 = vld [vmem:[#allocation18_spill] sm:$0xff]  ;;  %v3836_v28 = vld [vmem:[#allocation12_spill] sm:$0xff] }
  0x8c   : > { %2038 = vmatprep.mubr.f32.mxu1 %v590_v63  ;;  %2382 = vmatprep.subr.bf16.mxu1 %v2381_v13  ;;  %v3835_v56 = vld [vmem:[#allocation10_spill] sm:$0xff] }
  0x8d   : > { %2204 = vmatmul.mubr.f32.gmra.mrb[12].mxu0 %v578_v20  ;;  %2478 = vmatprep.subr.bf16.mxu0 %v2477_v25  ;;  %v3837_v30 = vld [vmem:[#allocation14_spill] sm:$0xff]  ;;  %v3840_v20 = vld [vmem:[#allocation21_spill] sm:$0xff] }
  0x8e   : > { %2206 = vmatprep.mubr.f32.mxu0 %v588_v21  ;;  %2039 = vmatmul.mubr.f32.gmra.mrb[14].mxu1 %v600_v3  ;;  %v248_v21 = vld [vmem:[%s3714_s1 + $0x10] sm:$0xff]  ;;  %v247_v17 = vld [vmem:[%s3714_s1 + $0x8] sm:$0xff] }
  0x8f   : > { %2384 = vmatpush3.bf16.msra.mxu1 %v2381_v13  ;;  %2480 = vmatpush3.bf16.msra.mxu0 %v2477_v25 }
  0x90   : > { %2073 = vmatprep.mubr.f32.mxu1 %v3025_v18  ;;  %2386 = vmatprep.subr.bf16.mxu1 %v2385_v26 }
  0x91   : > { %2207 = vmatmul.mubr.f32.gmra.mrb[14].mxu0 %v598_v53  ;;  %2482 = vmatprep.subr.bf16.mxu0 %v3006_v11 }
  0x92   : > { %2241 = vmatprep.mubr.f32.mxu0 %v3025_v18  ;;  %2074 = vmatmul.mubr.f32.vlgmr.msra.gmra.mrb[0].mxu1 %v3052_v27 }
  0x93   : > { %2388 = vmatpush3.bf16.msra.mxu1 %v2385_v26  ;;  %2076 = vmatprep.mubr.f32.mxu1 %v3093_v43 }
  0x94   : > { %2390 = vmatprep.subr.bf16.mxu1 %v2389_v62  ;;  %2695 = vset.pattern.permute.xlu0 %v2832_v24 }
  0x95   : > { %2242 = vmatmul.mubr.f32.vlgmr.msra.gmra.mrb[0].mxu0 %v3052_v27  ;;  %275 = vperm.xlu1 %2696, %v248_v21  }
  0x96   : > { %2484 = vmatpush3.bf16.msra.mxu0 %v3006_v11  ;;  %2244 = vmatprep.mubr.f32.mxu0 %v3093_v43  ;;  %v2397_v11 = vpack.c.bf16 %v3224_v15, %v3207_v58  ;;  %v3828_v58 = vld [vmem:[#allocation25_spill] sm:$0xff] }
  0x97   : > { %2486 = vmatprep.subr.bf16.mxu0 %v3010_v14  ;;  %2077 = vmatmul.mubr.f32.gmra.mrb[2].mxu1 %v3110_v48  ;;  %v3831_v15 = vld [vmem:[#allocation17_spill] sm:$0xff] }
  0x98   : > { %2392 = vmatpush3.bf16.msra.mxu1 %v2389_v62  ;;  %2079 = vmatprep.mubr.f32.mxu1 %v3146_v0 }
  0x99   : > { %2245 = vmatmul.mubr.f32.gmra.mrb[2].mxu0 %v3110_v48  ;;  %2394 = vmatprep.subr.bf16.mxu1 %v2393_v36 }
  0x9a   : > { %2488 = vmatpush3.bf16.msra.mxu0 %v3010_v14  ;;  %2247 = vmatprep.mubr.f32.mxu0 %v3146_v0  ;;  %v3826_v14 = vld [vmem:[#allocation11_spill] sm:$0xff] }
  0x9b   : > { %2490 = vmatprep.subr.bf16.mxu0 %v3033_v19  ;;  %2080 = vmatmul.mubr.f32.gmra.mrb[4].mxu1 %v3149_v2 }
  0x9c   : > { %2396 = vmatpush3.bf16.msra.mxu1 %v2393_v36  ;;  %2082 = vmatprep.mubr.f32.mxu1 %v3825_v37 }
  0x9d   : > { %2248 = vmatmul.mubr.f32.gmra.mrb[4].mxu0 %v3149_v2  ;;  %2398 = vmatprep.subr.bf16.mxu1 %v2397_v11 }
  0x9e   : > { %2492 = vmatpush3.bf16.msra.mxu0 %v3033_v19  ;;  %2250 = vmatprep.mubr.f32.mxu0 %v3825_v37  ;;  %v3829_v19 = vld [vmem:[#allocation13_spill] sm:$0xff] }
  0x9f   : > { %2494 = vmatprep.subr.bf16.mxu0 %v3826_v14  ;;  %2083 = vmatmul.mubr.f32.gmra.mrb[6].mxu1 %v3827_v50 }
  0xa0   : > { %2400 = vmatpush3.bf16.msra.mxu1 %v2397_v11  ;;  %2085 = vmatprep.mubr.f32.mxu1 %v3828_v58 }
  0xa1   : > { %2251 = vmatmul.mubr.f32.gmra.mrb[6].mxu0 %v3827_v50  ;;  %2402 = vmatprep.subr.bf16.mxu1 %v2401_v49 }
  0xa2   : > { %2496 = vmatpush3.bf16.msra.mxu0 %v3826_v14  ;;  %2253 = vmatprep.mubr.f32.mxu0 %v3828_v58 }
  0xa3   : > { %2498 = vmatprep.subr.bf16.mxu0 %v3829_v19  ;;  %2086 = vmatmul.mubr.f32.gmra.mrb[8].mxu1 %v3290_v44 }
  0xa4   : > { %2404 = vmatpush3.bf16.msra.mxu1 %v2401_v49  ;;  %2088 = vmatprep.mubr.f32.mxu1 %v3297_v54 }
  0xa5   : > { %2254 = vmatmul.mubr.f32.gmra.mrb[8].mxu0 %v3290_v44  ;;  %2406 = vmatprep.subr.bf16.mxu1 %v2405_v6 }
  0xa6   : > { %2500 = vmatpush3.bf16.msra.mxu0 %v3829_v19  ;;  %2256 = vmatprep.mubr.f32.mxu0 %v3297_v54 }
  0xa7   : > { %2502 = vmatprep.subr.bf16.mxu0 %v3830_v7  ;;  %2089 = vmatmul.mubr.f32.gmra.mrb[10].mxu1 %v3336_v1 }
  0xa8   : > { %2408 = vmatpush3.bf16.msra.mxu1 %v2405_v6  ;;  %2091 = vmatprep.mubr.f32.mxu1 %v3355_v55 }
  0xa9   : > { %2257 = vmatmul.mubr.f32.gmra.mrb[10].mxu0 %v3336_v1  ;;  %2410 = vmatprep.subr.bf16.mxu1 %v2409_v12 }
  0xaa   : > { %2504 = vmatpush3.bf16.msra.mxu0 %v3830_v7  ;;  %2259 = vmatprep.mubr.f32.mxu0 %v3355_v55 }
  0xab   : > { %2506 = vmatprep.subr.bf16.mxu0 %v3831_v15  ;;  %2092 = vmatmul.mubr.f32.gmra.mrb[12].mxu1 %v3832_v16 }
  0xac   : > { %2412 = vmatpush3.bf16.msra.mxu1 %v2409_v12  ;;  %2094 = vmatprep.mubr.f32.mxu1 %v3833_v51 }
  0xad   : > { %2260 = vmatmul.mubr.f32.gmra.mrb[12].mxu0 %v3832_v16  ;;  %2414 = vmatprep.subr.bf16.mxu1 %v2413_v57 }
  0xae   : > { %2508 = vmatpush3.bf16.msra.mxu0 %v3831_v15  ;;  %2262 = vmatprep.mubr.f32.mxu0 %v3833_v51 }
  0xaf   : > { %2510 = vmatprep.subr.bf16.mxu0 %v3834_v10  ;;  %2095 = vmatmul.mubr.f32.gmra.mrb[14].mxu1 %v3424_v46 }
  0xb0   : > { %2416 = vmatpush3.bf16.msra.mxu1 %v2413_v57  ;;  %2129 = vmatprep.mubr.f32.mxu1 %v3835_v56 }
  0xb1   : > { %2263 = vmatmul.mubr.f32.gmra.mrb[14].mxu0 %v3424_v46  ;;  %265 = vperm.xlu0 %2695, %v246_v33  }
  0xb2   : > { %2512 = vmatpush3.bf16.msra.mxu0 %v3834_v10  ;;  %2297 = vmatprep.mubr.f32.mxu0 %v3025_v18  ;;  %v249_v18 = vld [vmem:[%s3714_s1 + $0x18] sm:$0xff] }
  0xb3   : > { %2130 = vmatmul.mubr.f32.vlgmr.msra.gmra.mrb[0].mxu1 %v3836_v28  ;;  %280 = vperm.xlu1 %2696, %v249_v18  }
  0xb4   : > { %2132 = vmatprep.mubr.f32.mxu1 %v3837_v30 }
  0xb5   : > { %2298 = vmatmul.mubr.f32.vlgmr.msra.gmra.mrb[0].mxu0 %v3052_v27  ;;  %270 = vperm.xlu0 %2695, %v247_v17   ;;  %v251_v27 = vld [vmem:[%s3714_s1 + $0x28] sm:$0xff] }
  0xb6   : > { %2300 = vmatprep.mubr.f32.mxu0 %v3093_v43  ;;  %v250_v43 = vld [vmem:[%s3714_s1 + $0x20] sm:$0xff] }
  0xb7   : > { %2133 = vmatmul.mubr.f32.gmra.mrb[2].mxu1 %v3838_v35  ;;  %290 = vperm.xlu1 %2696, %v251_v27  }
  0xb8   : > { %2135 = vmatprep.mubr.f32.mxu1 %v3839_v59 }
  0xb9   : > { %2301 = vmatmul.mubr.f32.gmra.mrb[2].mxu0 %v3110_v48  ;;  %285 = vperm.xlu0 %2695, %v250_v43   ;;  %v253_v48 = vld [vmem:[%s3714_s1 + $0x38] sm:$0xff] }
  0xba   : > { %2303 = vmatprep.mubr.f32.mxu0 %v3146_v0  ;;  %v252_v0 = vld [vmem:[%s3714_s1 + $0x30] sm:$0xff] }
  0xbb   : > { %2136 = vmatmul.mubr.f32.gmra.mrb[4].mxu1 %v3840_v20  ;;  %300 = vperm.xlu1 %2696, %v253_v48  }
  0xbc   : > { %2138 = vmatprep.mubr.f32.mxu1 %v3841_v22 }
  0xbd   : > { %2304 = vmatmul.mubr.f32.gmra.mrb[4].mxu0 %v3149_v2  ;;  %295 = vperm.xlu0 %2695, %v252_v0   ;;  %v255_v2 = vld [vmem:[%s3714_s1 + $0x48] sm:$0xff] }
  0xbe   : > { %2306 = vmatprep.mubr.f32.mxu0 %v3825_v37 }
  0xbf   : > { %2139 = vmatmul.mubr.f32.gmra.mrb[6].mxu1 %v3842_v39  ;;  %310 = vperm.xlu1 %2696, %v255_v2  }
  0xc0   : > { %2141 = vmatprep.mubr.f32.mxu1 %v3288_v23  ;;  %v257_v23 = vld [vmem:[%s3714_s1 + $0x58] sm:$0xff] }
  0xc1   : > { %2307 = vmatmul.mubr.f32.gmra.mrb[6].mxu0 %v3827_v50  ;;  %305 = vperm.xlu0 %2695, %v254_v40  }
  0xc2   : > { %2309 = vmatprep.mubr.f32.mxu0 %v3828_v58 }
  0xc3   : > { %2142 = vmatmul.mubr.f32.gmra.mrb[8].mxu1 %v3334_v41  ;;  %v3844_v41 = vld [vmem:[#allocation28_spill] sm:$0xff]  ;;  %320 = vperm.xlu1 %2696, %v257_v23  }
  0xc4   : > { %2144 = vmatprep.mubr.f32.mxu1 %v3346_v61  ;;  %v3845_v61 = vld [vmem:[#allocation30_spill] sm:$0xff] }
  0xc5   : > { %2310 = vmatmul.mubr.f32.gmra.mrb[8].mxu0 %v3290_v44  ;;  %315 = vperm.xlu0 %2695, %v256_v34   ;;  %v259_v44 = vld [vmem:[%s3714_s1 + $0x68] sm:$0xff] }
  0xc6   : > { %2312 = vmatprep.mubr.f32.mxu0 %v3297_v54  ;;  %v258_v54 = vld [vmem:[%s3714_s1 + $0x60] sm:$0xff] }
  0xc7   : > { %2145 = vmatmul.mubr.f32.gmra.mrb[10].mxu1 %v3843_v47  ;;  %330 = vperm.xlu1 %2696, %v259_v44  }
  0xc8   : > { %2147 = vmatprep.mubr.f32.mxu1 %v3844_v41 }
  0xc9   : > { %2313 = vmatmul.mubr.f32.gmra.mrb[10].mxu0 %v3336_v1  ;;  %325 = vperm.xlu0 %2695, %v258_v54   ;;  %v261_v1 = vld [vmem:[%s3714_s1 + $0x78] sm:$0xff] }
  0xca   : > { %2315 = vmatprep.mubr.f32.mxu0 %v3355_v55  ;;  %v260_v55 = vld [vmem:[%s3714_s1 + $0x70] sm:$0xff] }
  0xcb   : > { %2148 = vmatmul.mubr.f32.gmra.mrb[12].mxu1 %v3845_v61  ;;  %340 = vperm.xlu1 %2696, %v261_v1  }
  0xcc   : > { %2150 = vmatprep.mubr.f32.mxu1 %v3441_v52 }
  0xcd   : > { %2316 = vmatmul.mubr.f32.gmra.mrb[12].mxu0 %v3832_v16  ;;  %335 = vperm.xlu0 %2695, %v260_v55  }
  0xce   : > { %2318 = vmatprep.mubr.f32.mxu0 %v3833_v51 }
  0xcf   : > { %2151 = vmatmul.mubr.f32.gmra.mrb[14].mxu1 %v3451_v60 }
  0xd1   : > { %2319 = vmatmul.mubr.f32.gmra.mrb[14].mxu0 %v3424_v46 }
 0x114   : > { %v276_v45 = vpop.permute.xlu1 %275 }
 0x115   : > { %v351_v11 = vmul.f32 %v3617_v32, %v276_v45 }
 0x130   : > { %v266_v52 = vpop.permute.xlu0 %265 }
 0x131   : > { %v349_v4 = vmul.f32 %v3617_v32, %v266_v52 }
 0x132   : > { %v281_v9 = vpop.permute.xlu1 %280 }
 0x133   : > { %v352_v62 = vmul.f32 %v3617_v32, %v281_v9 }
 0x134   : > { %v271_v53 = vpop.permute.xlu0 %270 }
 0x135   : > { %v350_v5 = vmul.f32 %v3617_v32, %v271_v53 }
 0x136   : > { %v291_v42 = vpop.permute.xlu1 %290 }
 0x137   : > { %v354_v7 = vmul.f32 %v3617_v32, %v291_v42 }
 0x138   : > { %v286_v38 = vpop.permute.xlu0 %285 }
 0x139   : > { %v353_v16 = vmul.f32 %v3617_v32, %v286_v38 }
 0x13a   : > { %v301_v8 = vpop.permute.xlu1 %300 }
 0x13b   : > { %v356_v30 = vmul.f32 %v3617_v32, %v301_v8 }
 0x13c   : > { %v296_v29 = vpop.permute.xlu0 %295 }
 0x13d   : > { %v355_v17 = vmul.f32 %v3617_v32, %v296_v29 }
 0x13e   : > { %v311_v60 = vpop.permute.xlu1 %310 }
 0x13f   : > { %v358_v0 = vmul.f32 %v3617_v32, %v311_v60 }
 0x140   : > { %v306_v31 = vpop.permute.xlu0 %305 }
 0x141   : > { %v357_v23 = vmul.f32 %v3617_v32, %v306_v31 }
 0x142   : > { %v321_v12 = vpop.permute.xlu1 %320 }
 0x143   : > { %v360_v55 = vmul.f32 %v3617_v32, %v321_v12 }
 0x144   : > { %v316_v15 = vpop.permute.xlu0 %315 }
 0x145   : > { %v359_v52 = vmul.f32 %v3617_v32, %v316_v15 }
 0x146   : > { %v331_v39 = vpop.permute.xlu1 %330 }
 0x148   : > { %v326_v2 = vpop.permute.xlu0 %325 }
 0x14a   : > { %v341_v60 = vpop.permute.xlu1 %340 }
 0x14c   : > { %v336_v31 = vpop.permute.xlu0 %335 }
 0x186   : > { %v2131_v46 = vpop.f32.mrb[0].mxu1 }
 0x187   : > { %v2513_v13 = vadd.f32 %v2131_v46, %v350_v5  ;;  %v947_v25 = vpop.f32.mrb[1].mxu1 }
 0x188   : > { %v2299_v63 = vpop.f32.mrb[0].mxu0  ;;  %v2515_v26 = vadd.f32 %v947_v25, %v349_v4  ;;  %v362_v4 = vmul.f32 %v3617_v32, %v331_v39 }
 0x189   : > { %v1557_v3 = vpop.f32.mrb[1].mxu0  ;;  %v2514_v36 = vadd.f32 %v2513_v13, %v2299_v63  ;;  %v361_v63 = vmul.f32 %v3617_v32, %v326_v2 }
 0x18a   : > { %v2516_v37 = vadd.f32 %v2515_v26, %v1557_v3  ;;  %v2134_v14 = vpop.f32.mrb[2].mxu1 }
 0x18b   : > { %1652 = vst [vmem:[%s2993_s11 + $0x8] sm:$0xff] %v2514_v36  ;;  %v2517_v50 = vadd.f32 %v2134_v14, %v352_v62  ;;  %v961_v58 = vpop.f32.mrb[3].mxu1 }
 0x18c   : > { %v2302_v49 = vpop.f32.mrb[2].mxu0  ;;  %1651 = vst [vmem:[%s2993_s11] sm:$0xff] %v2516_v37  ;;  %v2519_v6 = vadd.f32 %v961_v58, %v351_v11  ;;  %v364_v37 = vmul.f32 %v3617_v32, %v341_v60 }
 0x18d   : > { %v1569_v19 = vpop.f32.mrb[3].mxu0  ;;  %v2518_v57 = vadd.f32 %v2517_v50, %v2302_v49  ;;  %v363_v49 = vmul.f32 %v3617_v32, %v336_v31 }
 0x18e   : > { %v2520_v51 = vadd.f32 %v2519_v6, %v1569_v19  ;;  %v2137_v10 = vpop.f32.mrb[4].mxu1 }
 0x18f   : > { %1654 = vst [vmem:[%s2993_s11 + $0x18] sm:$0xff] %v2518_v57  ;;  %v2521_v24 = vadd.f32 %v2137_v10, %v354_v7  ;;  %v975_v21 = vpop.f32.mrb[5].mxu1 }
 0x190   : > { %v2305_v56 = vpop.f32.mrb[4].mxu0  ;;  %1653 = vst [vmem:[%s2993_s11 + $0x10] sm:$0xff] %v2520_v51  ;;  %v2523_v28 = vadd.f32 %v975_v21, %v353_v16 }
 0x191   : > { %v1581_v33 = vpop.f32.mrb[5].mxu0  ;;  %v2522_v18 = vadd.f32 %v2521_v24, %v2305_v56 }
 0x192   : > { %v2524_v35 = vadd.f32 %v2523_v28, %v1581_v33  ;;  %v2140_v59 = vpop.f32.mrb[6].mxu1 }
 0x193   : > { %1656 = vst [vmem:[%s2993_s11 + $0x28] sm:$0xff] %v2522_v18  ;;  %v2525_v43 = vadd.f32 %v2140_v59, %v356_v30  ;;  %v989_v20 = vpop.f32.mrb[7].mxu1 }
 0x194   : > { %v2308_v27 = vpop.f32.mrb[6].mxu0  ;;  %1655 = vst [vmem:[%s2993_s11 + $0x20] sm:$0xff] %v2524_v35  ;;  %v2527_v48 = vadd.f32 %v989_v20, %v355_v17 }
 0x195   : > { %v1593_v22 = vpop.f32.mrb[7].mxu0  ;;  %v2526_v40 = vadd.f32 %v2525_v43, %v2308_v27 }
 0x196   : > { %v2528_v34 = vadd.f32 %v2527_v48, %v1593_v22  ;;  %v2143_v47 = vpop.f32.mrb[8].mxu1 }
 0x197   : > { %1658 = vst [vmem:[%s2993_s11 + $0x38] sm:$0xff] %v2526_v40  ;;  %v2529_v44 = vadd.f32 %v2143_v47, %v358_v0  ;;  %v1003_v54 = vpop.f32.mrb[9].mxu1 }
 0x198   : > { %v2311_v41 = vpop.f32.mrb[8].mxu0  ;;  %1657 = vst [vmem:[%s2993_s11 + $0x30] sm:$0xff] %v2528_v34  ;;  %v2531_v1 = vadd.f32 %v1003_v54, %v357_v23 }
 0x199   : > { %v1605_v61 = vpop.f32.mrb[9].mxu0  ;;  %v2530_v45 = vadd.f32 %v2529_v44, %v2311_v41 }
 0x19a   : > { %v2532_v9 = vadd.f32 %v2531_v1, %v1605_v61  ;;  %v2146_v53 = vpop.f32.mrb[10].mxu1 }
 0x19b   : > { %1660 = vst [vmem:[%s2993_s11 + $0x48] sm:$0xff] %v2530_v45  ;;  %v2533_v38 = vadd.f32 %v2146_v53, %v360_v55  ;;  %v1017_v8 = vpop.f32.mrb[11].mxu1 }
 0x19c   : > { %v2314_v42 = vpop.f32.mrb[10].mxu0  ;;  %1659 = vst [vmem:[%s2993_s11 + $0x40] sm:$0xff] %v2532_v9  ;;  %v2535_v5 = vadd.f32 %v1017_v8, %v359_v52 }
 0x19d   : > { %v1617_v29 = vpop.f32.mrb[11].mxu0  ;;  %v2534_v46 = vadd.f32 %v2533_v38, %v2314_v42 }
 0x19e   : > { %v2536_v13 = vadd.f32 %v2535_v5, %v1617_v29  ;;  %v2149_v25 = vpop.f32.mrb[12].mxu1 }
 0x19f   : > { %1662 = vst [vmem:[%s2993_s11 + $0x58] sm:$0xff] %v2534_v46  ;;  %v2537_v26 = vadd.f32 %v2149_v25, %v362_v4  ;;  %v1031_v62 = vpop.f32.mrb[13].mxu1 }
 0x1a0   : > { %v2317_v3 = vpop.f32.mrb[12].mxu0  ;;  %1661 = vst [vmem:[%s2993_s11 + $0x50] sm:$0xff] %v2536_v13  ;;  %v2539_v11 = vadd.f32 %v1031_v62, %v361_v63 }
 0x1a1   : > { %v1629_v36 = vpop.f32.mrb[13].mxu0  ;;  %v2538_v14 = vadd.f32 %v2537_v26, %v2317_v3 }
 0x1a2   : > { %v2540_v50 = vadd.f32 %v2539_v11, %v1629_v36  ;;  %v2152_v58 = vpop.f32.mrb[14].mxu1 }
 0x1a3   : > { %1664 = vst [vmem:[%s2993_s11 + $0x68] sm:$0xff] %v2538_v14  ;;  %v2541_v6 = vadd.f32 %v2152_v58, %v364_v37  ;;  %v1045_v7 = vpop.f32.mrb[15].mxu1 }
 0x1a4   : > { %v2320_v19 = vpop.f32.mrb[14].mxu0  ;;  %1663 = vst [vmem:[%s2993_s11 + $0x60] sm:$0xff] %v2540_v50  ;;  %v2543_v15 = vadd.f32 %v1045_v7, %v363_v49 }
 0x1a5   : > { %v1641_v12 = vpop.f32.mrb[15].mxu0  ;;  %v2542_v57 = vadd.f32 %v2541_v6, %v2320_v19 }
 0x1a6   : > { %v2544_v32 = vadd.f32 %v2543_v15, %v1641_v12 }
 0x1a7   : > { %1666 = vst [vmem:[%s2993_s11 + $0x78] sm:$0xff] %v2542_v57  ;;  %1667 = vst [vmem:[#allocation2 - $0x7] sm:$0x80] %v2542_v57 }
 0x1a8   : > { %1665 = vst [vmem:[%s2993_s11 + $0x70] sm:$0xff] %v2544_v32 }
 0x1a9   : > { %2740 = shalt.err (!%p2737_p3)
}
 0x1aa   : > { %s2741_s11 = scalar_lea.hbm %s3655_s29, 2048  ;;  %s2745_s9 = scalar_lea.hbm %s3716_s3, 8192 }
 0x1ab   : > { %p2742_p6 = scmp.ne.s32.totalorder %s3655_s29, %s2741_s11  ;;  %p2746_p5 = scmp.lt.u32.totalorder %s3655_s29, %s3716_s3 }
 0x1ac   : > { %p2747_p10 = scmp.lt.u32.totalorder %s2745_s9, %s2741_s11  ;;  %p2749_p8 = scmp.lt.u32.totalorder %s2741_s11, %s3655_s29 }
 0x1ad   : > { %p2743_p7 = pnand %p2742_p6, %p3846_p12 }
 0x1ae   : > { %p2748_p9 = por %p2747_p10, %p2746_p5 }
 0x1af   : > { %p2744_p2 = pneg %p2743_p7 }
 0x1b0   : > { %p2750_p0 = por %p2749_p8, %p2748_p9 }
 0x1b2   : > { %p2751_p11 = pnand %p2750_p0, %p2744_p2 }
 0x1b4   : > { %2754 = shalt.err (!%p2751_p11)
}
 0x1b5   : > { %s2834_s15 = smov 128   ;;  %s2835_s25 = smov 256  }
 0x1b6   : > { %s2836_s24 = smov 8  }
 0x1b7   : > { %2611 = dma.vmem_to_hbm [thread:$0]  (%p3846_p12), %s3657_s16, 2048, %s3655_s29, %s1669_s10, %s2834_s15, %s2835_s25, %s2836_s24  }
 0x1b8 PF: > { %p2622_p13 = scmp.ge.s32.totalorder %s2825_s19, 2  ;;  %s1699_s20 = sand.u32 1, %s2797_s12  }
 0x1b9   : > { %p3847_p1 = scmp.ne.s32.totalorder %s3766_s4, 0  ;;  %s1700_s21 = scalar_lea.sflag [#allocation5], %s1699_s20 }
 0x1bb   : > { %p2618_p4 = pnand %p2622_p13, %p3847_p1 }
 0x1bd   : > { %2792 = dma.done.wait (!%p2618_p4), %s1700_s21, 2048  }
 0x1be   : > { %2794 = vsyncadd (!%p2618_p4), %s1700_s21, 4294965248  ;;  %s19_s19 = sadd.s32 1, %s2825_s19   ;;  %s3848_s28 = sld [smem:[#allocation9_spill]] }
 0x1bf   : > { %p16_p3 = scmp.ge.s32.totalorder %s19_s19, 6   ;;  %s3849_s12 = smov %s2801_s13 }
 0x1c0   : > { %s3850_s13 = smov %s2805_s14  ;;  %s3851_s14 = smov %s2935_s6 }
 0x1c1   : > { %s3852_s15 = smov %s2817_s17  ;;  %s3853_s16 = smov %s2821_s18 }
 0x1c2   : > { %s3854_s17 = smov %s3857_s22  ;;  %18 = sbr.rel (!%p16_p3) target bundleno = 7 (0x7), region = 81 }
 0x1c4   : > { %s3855_s18 = smov %s3848_s28 }
 0x1c9   :  { %1705 = vsyncpa [#allocation4], 1 }
 0x1ca   :  { %1707 = vsyncpa [#allocation4 + $0x1], 1 }
 0x1cb   :  { %1708 = vsyncpa [#allocation5], 1 }
 0x1cc   :  { %1710 = vsyncpa [#allocation5 + $0x1], 1 }

</bundles_post_ra>
